<compile_context>
chip_gen: v5e
topology: v5e:2x2
jax: 0.10.0
libtpu: 0.0.40
codegen_flags: <defaults>
</compile_context>

<pallas_src>
import functools

import numpy as np
import jax
import jax.numpy as jnp
from jax.experimental import pallas as pl
from jax.experimental.pallas import tpu as pltpu


def _time_embed_kernel(ts_ref, t1_ref, w2_ref, b2_ref, o_ref, x_buf, sem):
    # ts_ref: (Bp,)        int32  SMEM  -- padded timestep indices
    # t1_ref: (max_len,Hp) f32    HBM   -- pe @ w1 + b1, lane-padded (pl.ANY)
    # w2_ref: (Hp, Hp)     f32    VMEM
    # b2_ref: (1,  Hp)     f32    VMEM
    # o_ref : (Bp, Hp)     f32    VMEM  -- lane-dense output (unmasked vst)
    # x_buf : (Bp, Hp)     f32    VMEM scratch (gathered T1 rows)
    # sem   : (Bp,)        DMA semaphores
    Bp = o_ref.shape[0]
    max_len = t1_ref.shape[0]

    # True row gather: one small DMA per batch row, HBM -> VMEM scratch.
    # Indices are clamped (PyTorch pe[timesteps] would raise on OOB instead).
    copies = []
    for i in range(Bp):                       # Bp is tiny & static -> unrolled
        row = jnp.clip(ts_ref[i], 0, max_len - 1)
        cp = pltpu.make_async_copy(t1_ref.at[row], x_buf.at[i], sem.at[i])
        cp.start()
        copies.append(cp)
    for cp in copies:
        cp.wait()

    # SiLU (EUP/VPU, f32) then the remaining Linear on the MXU.
    h = x_buf[...]
    h = h * jax.nn.sigmoid(h)
    y = jnp.dot(h, w2_ref[...], preferred_element_type=jnp.float32) + b2_ref[...]
    o_ref[...] = y.astype(o_ref.dtype)


def init_timestep_embedder_params(pe, w1, b1, w2, b2):
    """One-time prep (call OUTSIDE jit): fold Linear#1 into the PE table and
    zero-pad everything to a lane-dense feature width.

    pe: (max_len, 1, H); w1,w2: (in, out); b1,b2: (1, H).
    Returns (t1p:(max_len,Hp), w2p:(Hp,Hp), b2p:(1,Hp)).
    """
    max_len, _, H = pe.shape
    Hp = ((H + 127) // 128) * 128
    hi = jax.lax.Precision.HIGHEST  # full f32 to match the in-kernel MXU path

    pe2d = pe.reshape(max_len, H).astype(jnp.float32)
    t1 = jnp.dot(pe2d, w1.astype(jnp.float32), precision=hi) \
        + b1.reshape(1, H).astype(jnp.float32)

    t1p = jnp.zeros((max_len, Hp), jnp.float32).at[:, :H].set(t1)
    w2p = jnp.zeros((Hp, Hp), jnp.float32).at[:H, :H].set(w2.astype(jnp.float32))
    b2p = jnp.zeros((1, Hp), jnp.float32).at[:, :H].set(
        b2.reshape(1, H).astype(jnp.float32))
    # Padding is numerically exact: padded T1 columns are 0, SiLU(0)=0, and the
    # corresponding rows/columns of w2p / b2p are 0.
    return t1p, w2p, b2p


def timestep_embedder_forward(timesteps, t1p, w2p, b2p, h_dim):
    """timesteps: (B,) int; returns (1, B, h_dim) like the PyTorch module."""
    B = timesteps.shape[0]
    max_len, Hp = t1p.shape
    Bp = max(8, ((B + 7) // 8) * 8)  # pad batch to the f32 sublane minimum

    # Padded rows index timestep 0; their (valid) outputs are sliced off below.
    ts_p = jnp.zeros((Bp,), jnp.int32).at[:B].set(timesteps.astype(jnp.int32))

    out_p = pl.pallas_call(
        _time_embed_kernel,
        out_shape=jax.ShapeDtypeStruct((Bp, Hp), jnp.float32),
        in_specs=[
            pl.BlockSpec(memory_space=pltpu.MemorySpace.SMEM),   # timesteps
            pl.BlockSpec(memory_space=pl.ANY),                   # T1 table (HBM)
            pl.BlockSpec(memory_space=pltpu.MemorySpace.VMEM),   # w2p
            pl.BlockSpec(memory_space=pltpu.MemorySpace.VMEM),   # b2p
        ],
        out_specs=pl.BlockSpec(memory_space=pltpu.MemorySpace.VMEM),
        scratch_shapes=[
            pltpu.VMEM((Bp, Hp), jnp.float32),   # gathered T1 rows
            pltpu.SemaphoreType.DMA((Bp,)),      # one sem per gather DMA
        ],
    )(ts_p, t1p, w2p, b2p)

    # .permute(1, 0, 2) over a size-1 middle axis == reshape to (1, B, H).
    return out_p[:B, :h_dim].reshape(1, B, h_dim)


def build_positional_encoding(max_len, d_model):
    """Standard sinusoidal PE buffer, shape (max_len, 1, d_model) like torch."""
    pe = np.zeros((max_len, d_model), dtype=np.float32)
    position = np.arange(max_len, dtype=np.float32)[:, None]
    div_term = np.exp(np.arange(0, d_model, 2, dtype=np.float32)
                      * (-np.log(10000.0) / d_model))
    pe[:, 0::2] = np.sin(position * div_term)
    pe[:, 1::2] = np.cos(position * div_term)
    return jnp.asarray(pe[:, None, :])              # (max_len, 1, d_model)


if __name__ == "__main__":
    h_dim = 32
    max_len = 64
    batch = 2

    # Deterministic parameters (synthetic, no checkpoint).
    key = jax.random.PRNGKey(0)
    k1, k2, k3, k4 = jax.random.split(key, 4)
    scale = 1.0 / np.sqrt(h_dim)
    w1 = jax.random.uniform(k1, (h_dim, h_dim), jnp.float32, -scale, scale)  # (in, out)
    b1 = jax.random.uniform(k2, (1, h_dim), jnp.float32, -scale, scale)
    w2 = jax.random.uniform(k3, (h_dim, h_dim), jnp.float32, -scale, scale)  # (in, out)
    b2 = jax.random.uniform(k4, (1, h_dim), jnp.float32, -scale, scale)

    pe = build_positional_encoding(max_len, h_dim)   # (max_len, 1, h_dim)
    timesteps = jnp.array([3, 17], dtype=jnp.int32)  # (B,)

    # One-time parameter prep (outside the jitted forward).
    t1p, w2p, b2p = init_timestep_embedder_params(pe, w1, b1, w2, b2)
    t1p, w2p, b2p = jax.block_until_ready((t1p, w2p, b2p))

    fwd = jax.jit(functools.partial(timestep_embedder_forward, h_dim=h_dim))
    out = jax.block_until_ready(fwd(timesteps, t1p, w2p, b2p))

    # Pure-JAX reference (full-f32 matmuls, mirrors the PyTorch module exactly).
    hi = jax.lax.Precision.HIGHEST
    x_ref = pe[timesteps].reshape(batch, h_dim)
    h_ref = jnp.dot(x_ref, w1, precision=hi) + b1
    h_ref = h_ref * jax.nn.sigmoid(h_ref)
    y_ref = (jnp.dot(h_ref, w2, precision=hi) + b2) \
        .reshape(batch, 1, h_dim).transpose(1, 0, 2)

    assert out.shape == (1, batch, h_dim), out.shape
    np.testing.assert_allclose(np.asarray(out), np.asarray(y_ref),
                               rtol=1e-5, atol=1e-5)
    print("KERNEL_OK")
</pallas_src>

<mosaic_0001>
module attributes {stable_mosaic.version = 11 : i64} {
  func.func @_time_embed_kernel(%arg0: memref<8xi32, #tpu.memory_space<smem>>, %arg1: memref<64x128xf32, #tpu.memory_space<any>>, %arg2: memref<128x128xf32, #tpu.memory_space<vmem>>, %arg3: memref<1x128xf32, #tpu.memory_space<vmem>>, %arg4: memref<8x128xf32, #tpu.memory_space<vmem>>, %arg5: memref<8x128xf32, #tpu.memory_space<vmem>>, %arg6: memref<8x!tpu.dma_semaphore, #tpu.memory_space<semaphore_mem>>) attributes {dimension_semantics = [], scalar_prefetch = 0 : i64, scratch_operands = 2 : i64, tpu.core_type = #tpu.core_type<tc>} {
    %c0 = arith.constant 0 : index
    %0 = memref.load %arg0[%c0] : memref<8xi32, #tpu.memory_space<smem>>
    %c0_i32 = arith.constant 0 : i32
    %c63_i32 = arith.constant 63 : i32
    %1 = arith.maxsi %c0_i32, %0 : i32
    %2 = arith.minsi %c63_i32, %1 : i32
    %c0_i32_0 = arith.constant 0 : i32
    %c0_i32_1 = arith.constant 0 : i32
    %c0_i32_2 = arith.constant 0 : i32
    %3 = tpu.memref_slice %arg1[%2, %c0_i32_2] : memref<64x128xf32, #tpu.memory_space<any>> -> memref<1x128xf32, #tpu.memory_space<any>>
    %4 = tpu.memref_squeeze %3 : memref<1x128xf32, #tpu.memory_space<any>> -> memref<128xf32, #tpu.memory_space<any>>
    %c0_i32_3 = arith.constant 0 : i32
    %5 = tpu.memref_slice %arg5[%c0_i32_0, %c0_i32_3] : memref<8x128xf32, #tpu.memory_space<vmem>> -> memref<1x128xf32, #tpu.memory_space<vmem>>
    %6 = tpu.memref_squeeze %5 : memref<1x128xf32, #tpu.memory_space<vmem>> -> memref<128xf32, #tpu.memory_space<vmem>>
    %7 = tpu.memref_slice %arg6[%c0_i32_1] : memref<8x!tpu.dma_semaphore, #tpu.memory_space<semaphore_mem>> -> memref<1x!tpu.dma_semaphore, #tpu.memory_space<semaphore_mem>>
    %8 = tpu.memref_squeeze %7 : memref<1x!tpu.dma_semaphore, #tpu.memory_space<semaphore_mem>> -> memref<!tpu.dma_semaphore, #tpu.memory_space<semaphore_mem>>
    tpu.enqueue_dma source(%4 : memref<128xf32, #tpu.memory_space<any>>) target(%6 : memref<128xf32, #tpu.memory_space<vmem>>) target_semaphore(%8 : memref<!tpu.dma_semaphore, #tpu.memory_space<semaphore_mem>>)
    %c1 = arith.constant 1 : index
    %9 = memref.load %arg0[%c1] : memref<8xi32, #tpu.memory_space<smem>>
    %c0_i32_4 = arith.constant 0 : i32
    %c63_i32_5 = arith.constant 63 : i32
    %10 = arith.maxsi %c0_i32_4, %9 : i32
    %11 = arith.minsi %c63_i32_5, %10 : i32
    %c1_i32 = arith.constant 1 : i32
    %c1_i32_6 = arith.constant 1 : i32
    %c0_i32_7 = arith.constant 0 : i32
    %12 = tpu.memref_slice %arg1[%11, %c0_i32_7] : memref<64x128xf32, #tpu.memory_space<any>> -> memref<1x128xf32, #tpu.memory_space<any>>
    %13 = tpu.memref_squeeze %12 : memref<1x128xf32, #tpu.memory_space<any>> -> memref<128xf32, #tpu.memory_space<any>>
    %c0_i32_8 = arith.constant 0 : i32
    %14 = tpu.memref_slice %arg5[%c1_i32, %c0_i32_8] : memref<8x128xf32, #tpu.memory_space<vmem>> -> memref<1x128xf32, #tpu.memory_space<vmem>>
    %15 = tpu.memref_squeeze %14 : memref<1x128xf32, #tpu.memory_space<vmem>> -> memref<128xf32, #tpu.memory_space<vmem>>
    %16 = tpu.memref_slice %arg6[%c1_i32_6] : memref<8x!tpu.dma_semaphore, #tpu.memory_space<semaphore_mem>> -> memref<1x!tpu.dma_semaphore, #tpu.memory_space<semaphore_mem>>
    %17 = tpu.memref_squeeze %16 : memref<1x!tpu.dma_semaphore, #tpu.memory_space<semaphore_mem>> -> memref<!tpu.dma_semaphore, #tpu.memory_space<semaphore_mem>>
    tpu.enqueue_dma source(%13 : memref<128xf32, #tpu.memory_space<any>>) target(%15 : memref<128xf32, #tpu.memory_space<vmem>>) target_semaphore(%17 : memref<!tpu.dma_semaphore, #tpu.memory_space<semaphore_mem>>)
    %c2 = arith.constant 2 : index
    %18 = memref.load %arg0[%c2] : memref<8xi32, #tpu.memory_space<smem>>
    %c0_i32_9 = arith.constant 0 : i32
    %c63_i32_10 = arith.constant 63 : i32
    %19 = arith.maxsi %c0_i32_9, %18 : i32
    %20 = arith.minsi %c63_i32_10, %19 : i32
    %c2_i32 = arith.constant 2 : i32
    %c2_i32_11 = arith.constant 2 : i32
    %c0_i32_12 = arith.constant 0 : i32
    %21 = tpu.memref_slice %arg1[%20, %c0_i32_12] : memref<64x128xf32, #tpu.memory_space<any>> -> memref<1x128xf32, #tpu.memory_space<any>>
    %22 = tpu.memref_squeeze %21 : memref<1x128xf32, #tpu.memory_space<any>> -> memref<128xf32, #tpu.memory_space<any>>
    %c0_i32_13 = arith.constant 0 : i32
    %23 = tpu.memref_slice %arg5[%c2_i32, %c0_i32_13] : memref<8x128xf32, #tpu.memory_space<vmem>> -> memref<1x128xf32, #tpu.memory_space<vmem>>
    %24 = tpu.memref_squeeze %23 : memref<1x128xf32, #tpu.memory_space<vmem>> -> memref<128xf32, #tpu.memory_space<vmem>>
    %25 = tpu.memref_slice %arg6[%c2_i32_11] : memref<8x!tpu.dma_semaphore, #tpu.memory_space<semaphore_mem>> -> memref<1x!tpu.dma_semaphore, #tpu.memory_space<semaphore_mem>>
    %26 = tpu.memref_squeeze %25 : memref<1x!tpu.dma_semaphore, #tpu.memory_space<semaphore_mem>> -> memref<!tpu.dma_semaphore, #tpu.memory_space<semaphore_mem>>
    tpu.enqueue_dma source(%22 : memref<128xf32, #tpu.memory_space<any>>) target(%24 : memref<128xf32, #tpu.memory_space<vmem>>) target_semaphore(%26 : memref<!tpu.dma_semaphore, #tpu.memory_space<semaphore_mem>>)
    %c3 = arith.constant 3 : index
    %27 = memref.load %arg0[%c3] : memref<8xi32, #tpu.memory_space<smem>>
    %c0_i32_14 = arith.constant 0 : i32
    %c63_i32_15 = arith.constant 63 : i32
    %28 = arith.maxsi %c0_i32_14, %27 : i32
    %29 = arith.minsi %c63_i32_15, %28 : i32
    %c3_i32 = arith.constant 3 : i32
    %c3_i32_16 = arith.constant 3 : i32
    %c0_i32_17 = arith.constant 0 : i32
    %30 = tpu.memref_slice %arg1[%29, %c0_i32_17] : memref<64x128xf32, #tpu.memory_space<any>> -> memref<1x128xf32, #tpu.memory_space<any>>
    %31 = tpu.memref_squeeze %30 : memref<1x128xf32, #tpu.memory_space<any>> -> memref<128xf32, #tpu.memory_space<any>>
    %c0_i32_18 = arith.constant 0 : i32
    %32 = tpu.memref_slice %arg5[%c3_i32, %c0_i32_18] : memref<8x128xf32, #tpu.memory_space<vmem>> -> memref<1x128xf32, #tpu.memory_space<vmem>>
    %33 = tpu.memref_squeeze %32 : memref<1x128xf32, #tpu.memory_space<vmem>> -> memref<128xf32, #tpu.memory_space<vmem>>
    %34 = tpu.memref_slice %arg6[%c3_i32_16] : memref<8x!tpu.dma_semaphore, #tpu.memory_space<semaphore_mem>> -> memref<1x!tpu.dma_semaphore, #tpu.memory_space<semaphore_mem>>
    %35 = tpu.memref_squeeze %34 : memref<1x!tpu.dma_semaphore, #tpu.memory_space<semaphore_mem>> -> memref<!tpu.dma_semaphore, #tpu.memory_space<semaphore_mem>>
    tpu.enqueue_dma source(%31 : memref<128xf32, #tpu.memory_space<any>>) target(%33 : memref<128xf32, #tpu.memory_space<vmem>>) target_semaphore(%35 : memref<!tpu.dma_semaphore, #tpu.memory_space<semaphore_mem>>)
    %c4 = arith.constant 4 : index
    %36 = memref.load %arg0[%c4] : memref<8xi32, #tpu.memory_space<smem>>
    %c0_i32_19 = arith.constant 0 : i32
    %c63_i32_20 = arith.constant 63 : i32
    %37 = arith.maxsi %c0_i32_19, %36 : i32
    %38 = arith.minsi %c63_i32_20, %37 : i32
    %c4_i32 = arith.constant 4 : i32
    %c4_i32_21 = arith.constant 4 : i32
    %c0_i32_22 = arith.constant 0 : i32
    %39 = tpu.memref_slice %arg1[%38, %c0_i32_22] : memref<64x128xf32, #tpu.memory_space<any>> -> memref<1x128xf32, #tpu.memory_space<any>>
    %40 = tpu.memref_squeeze %39 : memref<1x128xf32, #tpu.memory_space<any>> -> memref<128xf32, #tpu.memory_space<any>>
    %c0_i32_23 = arith.constant 0 : i32
    %41 = tpu.memref_slice %arg5[%c4_i32, %c0_i32_23] : memref<8x128xf32, #tpu.memory_space<vmem>> -> memref<1x128xf32, #tpu.memory_space<vmem>>
    %42 = tpu.memref_squeeze %41 : memref<1x128xf32, #tpu.memory_space<vmem>> -> memref<128xf32, #tpu.memory_space<vmem>>
    %43 = tpu.memref_slice %arg6[%c4_i32_21] : memref<8x!tpu.dma_semaphore, #tpu.memory_space<semaphore_mem>> -> memref<1x!tpu.dma_semaphore, #tpu.memory_space<semaphore_mem>>
    %44 = tpu.memref_squeeze %43 : memref<1x!tpu.dma_semaphore, #tpu.memory_space<semaphore_mem>> -> memref<!tpu.dma_semaphore, #tpu.memory_space<semaphore_mem>>
    tpu.enqueue_dma source(%40 : memref<128xf32, #tpu.memory_space<any>>) target(%42 : memref<128xf32, #tpu.memory_space<vmem>>) target_semaphore(%44 : memref<!tpu.dma_semaphore, #tpu.memory_space<semaphore_mem>>)
    %c5 = arith.constant 5 : index
    %45 = memref.load %arg0[%c5] : memref<8xi32, #tpu.memory_space<smem>>
    %c0_i32_24 = arith.constant 0 : i32
    %c63_i32_25 = arith.constant 63 : i32
    %46 = arith.maxsi %c0_i32_24, %45 : i32
    %47 = arith.minsi %c63_i32_25, %46 : i32
    %c5_i32 = arith.constant 5 : i32
    %c5_i32_26 = arith.constant 5 : i32
    %c0_i32_27 = arith.constant 0 : i32
    %48 = tpu.memref_slice %arg1[%47, %c0_i32_27] : memref<64x128xf32, #tpu.memory_space<any>> -> memref<1x128xf32, #tpu.memory_space<any>>
    %49 = tpu.memref_squeeze %48 : memref<1x128xf32, #tpu.memory_space<any>> -> memref<128xf32, #tpu.memory_space<any>>
    %c0_i32_28 = arith.constant 0 : i32
    %50 = tpu.memref_slice %arg5[%c5_i32, %c0_i32_28] : memref<8x128xf32, #tpu.memory_space<vmem>> -> memref<1x128xf32, #tpu.memory_space<vmem>>
    %51 = tpu.memref_squeeze %50 : memref<1x128xf32, #tpu.memory_space<vmem>> -> memref<128xf32, #tpu.memory_space<vmem>>
    %52 = tpu.memref_slice %arg6[%c5_i32_26] : memref<8x!tpu.dma_semaphore, #tpu.memory_space<semaphore_mem>> -> memref<1x!tpu.dma_semaphore, #tpu.memory_space<semaphore_mem>>
    %53 = tpu.memref_squeeze %52 : memref<1x!tpu.dma_semaphore, #tpu.memory_space<semaphore_mem>> -> memref<!tpu.dma_semaphore, #tpu.memory_space<semaphore_mem>>
    tpu.enqueue_dma source(%49 : memref<128xf32, #tpu.memory_space<any>>) target(%51 : memref<128xf32, #tpu.memory_space<vmem>>) target_semaphore(%53 : memref<!tpu.dma_semaphore, #tpu.memory_space<semaphore_mem>>)
    %c6 = arith.constant 6 : index
    %54 = memref.load %arg0[%c6] : memref<8xi32, #tpu.memory_space<smem>>
    %c0_i32_29 = arith.constant 0 : i32
    %c63_i32_30 = arith.constant 63 : i32
    %55 = arith.maxsi %c0_i32_29, %54 : i32
    %56 = arith.minsi %c63_i32_30, %55 : i32
    %c6_i32 = arith.constant 6 : i32
    %c6_i32_31 = arith.constant 6 : i32
    %c0_i32_32 = arith.constant 0 : i32
    %57 = tpu.memref_slice %arg1[%56, %c0_i32_32] : memref<64x128xf32, #tpu.memory_space<any>> -> memref<1x128xf32, #tpu.memory_space<any>>
    %58 = tpu.memref_squeeze %57 : memref<1x128xf32, #tpu.memory_space<any>> -> memref<128xf32, #tpu.memory_space<any>>
    %c0_i32_33 = arith.constant 0 : i32
    %59 = tpu.memref_slice %arg5[%c6_i32, %c0_i32_33] : memref<8x128xf32, #tpu.memory_space<vmem>> -> memref<1x128xf32, #tpu.memory_space<vmem>>
    %60 = tpu.memref_squeeze %59 : memref<1x128xf32, #tpu.memory_space<vmem>> -> memref<128xf32, #tpu.memory_space<vmem>>
    %61 = tpu.memref_slice %arg6[%c6_i32_31] : memref<8x!tpu.dma_semaphore, #tpu.memory_space<semaphore_mem>> -> memref<1x!tpu.dma_semaphore, #tpu.memory_space<semaphore_mem>>
    %62 = tpu.memref_squeeze %61 : memref<1x!tpu.dma_semaphore, #tpu.memory_space<semaphore_mem>> -> memref<!tpu.dma_semaphore, #tpu.memory_space<semaphore_mem>>
    tpu.enqueue_dma source(%58 : memref<128xf32, #tpu.memory_space<any>>) target(%60 : memref<128xf32, #tpu.memory_space<vmem>>) target_semaphore(%62 : memref<!tpu.dma_semaphore, #tpu.memory_space<semaphore_mem>>)
    %c7 = arith.constant 7 : index
    %63 = memref.load %arg0[%c7] : memref<8xi32, #tpu.memory_space<smem>>
    %c0_i32_34 = arith.constant 0 : i32
    %c63_i32_35 = arith.constant 63 : i32
    %64 = arith.maxsi %c0_i32_34, %63 : i32
    %65 = arith.minsi %c63_i32_35, %64 : i32
    %c7_i32 = arith.constant 7 : i32
    %c7_i32_36 = arith.constant 7 : i32
    %c0_i32_37 = arith.constant 0 : i32
    %66 = tpu.memref_slice %arg1[%65, %c0_i32_37] : memref<64x128xf32, #tpu.memory_space<any>> -> memref<1x128xf32, #tpu.memory_space<any>>
    %67 = tpu.memref_squeeze %66 : memref<1x128xf32, #tpu.memory_space<any>> -> memref<128xf32, #tpu.memory_space<any>>
    %c0_i32_38 = arith.constant 0 : i32
    %68 = tpu.memref_slice %arg5[%c7_i32, %c0_i32_38] : memref<8x128xf32, #tpu.memory_space<vmem>> -> memref<1x128xf32, #tpu.memory_space<vmem>>
    %69 = tpu.memref_squeeze %68 : memref<1x128xf32, #tpu.memory_space<vmem>> -> memref<128xf32, #tpu.memory_space<vmem>>
    %70 = tpu.memref_slice %arg6[%c7_i32_36] : memref<8x!tpu.dma_semaphore, #tpu.memory_space<semaphore_mem>> -> memref<1x!tpu.dma_semaphore, #tpu.memory_space<semaphore_mem>>
    %71 = tpu.memref_squeeze %70 : memref<1x!tpu.dma_semaphore, #tpu.memory_space<semaphore_mem>> -> memref<!tpu.dma_semaphore, #tpu.memory_space<semaphore_mem>>
    tpu.enqueue_dma source(%67 : memref<128xf32, #tpu.memory_space<any>>) target(%69 : memref<128xf32, #tpu.memory_space<vmem>>) target_semaphore(%71 : memref<!tpu.dma_semaphore, #tpu.memory_space<semaphore_mem>>)
    %c0_i32_39 = arith.constant 0 : i32
    %c0_i32_40 = arith.constant 0 : i32
    %c0_i32_41 = arith.constant 0 : i32
    %72 = tpu.memref_slice %arg1[%2, %c0_i32_41] : memref<64x128xf32, #tpu.memory_space<any>> -> memref<1x128xf32, #tpu.memory_space<any>>
    %73 = tpu.memref_squeeze %72 : memref<1x128xf32, #tpu.memory_space<any>> -> memref<128xf32, #tpu.memory_space<any>>
    %c0_i32_42 = arith.constant 0 : i32
    %74 = tpu.memref_slice %arg5[%c0_i32_39, %c0_i32_42] : memref<8x128xf32, #tpu.memory_space<vmem>> -> memref<1x128xf32, #tpu.memory_space<vmem>>
    %75 = tpu.memref_squeeze %74 : memref<1x128xf32, #tpu.memory_space<vmem>> -> memref<128xf32, #tpu.memory_space<vmem>>
    %76 = tpu.memref_slice %arg6[%c0_i32_40] : memref<8x!tpu.dma_semaphore, #tpu.memory_space<semaphore_mem>> -> memref<1x!tpu.dma_semaphore, #tpu.memory_space<semaphore_mem>>
    %77 = tpu.memref_squeeze %76 : memref<1x!tpu.dma_semaphore, #tpu.memory_space<semaphore_mem>> -> memref<!tpu.dma_semaphore, #tpu.memory_space<semaphore_mem>>
    tpu.wait_dma2 semaphore(%77 : memref<!tpu.dma_semaphore, #tpu.memory_space<semaphore_mem>>) src(%73 : memref<128xf32, #tpu.memory_space<any>>) dst(%75 : memref<128xf32, #tpu.memory_space<vmem>>)
    %c1_i32_43 = arith.constant 1 : i32
    %c1_i32_44 = arith.constant 1 : i32
    %c0_i32_45 = arith.constant 0 : i32
    %78 = tpu.memref_slice %arg1[%11, %c0_i32_45] : memref<64x128xf32, #tpu.memory_space<any>> -> memref<1x128xf32, #tpu.memory_space<any>>
    %79 = tpu.memref_squeeze %78 : memref<1x128xf32, #tpu.memory_space<any>> -> memref<128xf32, #tpu.memory_space<any>>
    %c0_i32_46 = arith.constant 0 : i32
    %80 = tpu.memref_slice %arg5[%c1_i32_43, %c0_i32_46] : memref<8x128xf32, #tpu.memory_space<vmem>> -> memref<1x128xf32, #tpu.memory_space<vmem>>
    %81 = tpu.memref_squeeze %80 : memref<1x128xf32, #tpu.memory_space<vmem>> -> memref<128xf32, #tpu.memory_space<vmem>>
    %82 = tpu.memref_slice %arg6[%c1_i32_44] : memref<8x!tpu.dma_semaphore, #tpu.memory_space<semaphore_mem>> -> memref<1x!tpu.dma_semaphore, #tpu.memory_space<semaphore_mem>>
    %83 = tpu.memref_squeeze %82 : memref<1x!tpu.dma_semaphore, #tpu.memory_space<semaphore_mem>> -> memref<!tpu.dma_semaphore, #tpu.memory_space<semaphore_mem>>
    tpu.wait_dma2 semaphore(%83 : memref<!tpu.dma_semaphore, #tpu.memory_space<semaphore_mem>>) src(%79 : memref<128xf32, #tpu.memory_space<any>>) dst(%81 : memref<128xf32, #tpu.memory_space<vmem>>)
    %c2_i32_47 = arith.constant 2 : i32
    %c2_i32_48 = arith.constant 2 : i32
    %c0_i32_49 = arith.constant 0 : i32
    %84 = tpu.memref_slice %arg1[%20, %c0_i32_49] : memref<64x128xf32, #tpu.memory_space<any>> -> memref<1x128xf32, #tpu.memory_space<any>>
    %85 = tpu.memref_squeeze %84 : memref<1x128xf32, #tpu.memory_space<any>> -> memref<128xf32, #tpu.memory_space<any>>
    %c0_i32_50 = arith.constant 0 : i32
    %86 = tpu.memref_slice %arg5[%c2_i32_47, %c0_i32_50] : memref<8x128xf32, #tpu.memory_space<vmem>> -> memref<1x128xf32, #tpu.memory_space<vmem>>
    %87 = tpu.memref_squeeze %86 : memref<1x128xf32, #tpu.memory_space<vmem>> -> memref<128xf32, #tpu.memory_space<vmem>>
    %88 = tpu.memref_slice %arg6[%c2_i32_48] : memref<8x!tpu.dma_semaphore, #tpu.memory_space<semaphore_mem>> -> memref<1x!tpu.dma_semaphore, #tpu.memory_space<semaphore_mem>>
    %89 = tpu.memref_squeeze %88 : memref<1x!tpu.dma_semaphore, #tpu.memory_space<semaphore_mem>> -> memref<!tpu.dma_semaphore, #tpu.memory_space<semaphore_mem>>
    tpu.wait_dma2 semaphore(%89 : memref<!tpu.dma_semaphore, #tpu.memory_space<semaphore_mem>>) src(%85 : memref<128xf32, #tpu.memory_space<any>>) dst(%87 : memref<128xf32, #tpu.memory_space<vmem>>)
    %c3_i32_51 = arith.constant 3 : i32
    %c3_i32_52 = arith.constant 3 : i32
    %c0_i32_53 = arith.constant 0 : i32
    %90 = tpu.memref_slice %arg1[%29, %c0_i32_53] : memref<64x128xf32, #tpu.memory_space<any>> -> memref<1x128xf32, #tpu.memory_space<any>>
    %91 = tpu.memref_squeeze %90 : memref<1x128xf32, #tpu.memory_space<any>> -> memref<128xf32, #tpu.memory_space<any>>
    %c0_i32_54 = arith.constant 0 : i32
    %92 = tpu.memref_slice %arg5[%c3_i32_51, %c0_i32_54] : memref<8x128xf32, #tpu.memory_space<vmem>> -> memref<1x128xf32, #tpu.memory_space<vmem>>
    %93 = tpu.memref_squeeze %92 : memref<1x128xf32, #tpu.memory_space<vmem>> -> memref<128xf32, #tpu.memory_space<vmem>>
    %94 = tpu.memref_slice %arg6[%c3_i32_52] : memref<8x!tpu.dma_semaphore, #tpu.memory_space<semaphore_mem>> -> memref<1x!tpu.dma_semaphore, #tpu.memory_space<semaphore_mem>>
    %95 = tpu.memref_squeeze %94 : memref<1x!tpu.dma_semaphore, #tpu.memory_space<semaphore_mem>> -> memref<!tpu.dma_semaphore, #tpu.memory_space<semaphore_mem>>
    tpu.wait_dma2 semaphore(%95 : memref<!tpu.dma_semaphore, #tpu.memory_space<semaphore_mem>>) src(%91 : memref<128xf32, #tpu.memory_space<any>>) dst(%93 : memref<128xf32, #tpu.memory_space<vmem>>)
    %c4_i32_55 = arith.constant 4 : i32
    %c4_i32_56 = arith.constant 4 : i32
    %c0_i32_57 = arith.constant 0 : i32
    %96 = tpu.memref_slice %arg1[%38, %c0_i32_57] : memref<64x128xf32, #tpu.memory_space<any>> -> memref<1x128xf32, #tpu.memory_space<any>>
    %97 = tpu.memref_squeeze %96 : memref<1x128xf32, #tpu.memory_space<any>> -> memref<128xf32, #tpu.memory_space<any>>
    %c0_i32_58 = arith.constant 0 : i32
    %98 = tpu.memref_slice %arg5[%c4_i32_55, %c0_i32_58] : memref<8x128xf32, #tpu.memory_space<vmem>> -> memref<1x128xf32, #tpu.memory_space<vmem>>
    %99 = tpu.memref_squeeze %98 : memref<1x128xf32, #tpu.memory_space<vmem>> -> memref<128xf32, #tpu.memory_space<vmem>>
    %100 = tpu.memref_slice %arg6[%c4_i32_56] : memref<8x!tpu.dma_semaphore, #tpu.memory_space<semaphore_mem>> -> memref<1x!tpu.dma_semaphore, #tpu.memory_space<semaphore_mem>>
    %101 = tpu.memref_squeeze %100 : memref<1x!tpu.dma_semaphore, #tpu.memory_space<semaphore_mem>> -> memref<!tpu.dma_semaphore, #tpu.memory_space<semaphore_mem>>
    tpu.wait_dma2 semaphore(%101 : memref<!tpu.dma_semaphore, #tpu.memory_space<semaphore_mem>>) src(%97 : memref<128xf32, #tpu.memory_space<any>>) dst(%99 : memref<128xf32, #tpu.memory_space<vmem>>)
    %c5_i32_59 = arith.constant 5 : i32
    %c5_i32_60 = arith.constant 5 : i32
    %c0_i32_61 = arith.constant 0 : i32
    %102 = tpu.memref_slice %arg1[%47, %c0_i32_61] : memref<64x128xf32, #tpu.memory_space<any>> -> memref<1x128xf32, #tpu.memory_space<any>>
    %103 = tpu.memref_squeeze %102 : memref<1x128xf32, #tpu.memory_space<any>> -> memref<128xf32, #tpu.memory_space<any>>
    %c0_i32_62 = arith.constant 0 : i32
    %104 = tpu.memref_slice %arg5[%c5_i32_59, %c0_i32_62] : memref<8x128xf32, #tpu.memory_space<vmem>> -> memref<1x128xf32, #tpu.memory_space<vmem>>
    %105 = tpu.memref_squeeze %104 : memref<1x128xf32, #tpu.memory_space<vmem>> -> memref<128xf32, #tpu.memory_space<vmem>>
    %106 = tpu.memref_slice %arg6[%c5_i32_60] : memref<8x!tpu.dma_semaphore, #tpu.memory_space<semaphore_mem>> -> memref<1x!tpu.dma_semaphore, #tpu.memory_space<semaphore_mem>>
    %107 = tpu.memref_squeeze %106 : memref<1x!tpu.dma_semaphore, #tpu.memory_space<semaphore_mem>> -> memref<!tpu.dma_semaphore, #tpu.memory_space<semaphore_mem>>
    tpu.wait_dma2 semaphore(%107 : memref<!tpu.dma_semaphore, #tpu.memory_space<semaphore_mem>>) src(%103 : memref<128xf32, #tpu.memory_space<any>>) dst(%105 : memref<128xf32, #tpu.memory_space<vmem>>)
    %c6_i32_63 = arith.constant 6 : i32
    %c6_i32_64 = arith.constant 6 : i32
    %c0_i32_65 = arith.constant 0 : i32
    %108 = tpu.memref_slice %arg1[%56, %c0_i32_65] : memref<64x128xf32, #tpu.memory_space<any>> -> memref<1x128xf32, #tpu.memory_space<any>>
    %109 = tpu.memref_squeeze %108 : memref<1x128xf32, #tpu.memory_space<any>> -> memref<128xf32, #tpu.memory_space<any>>
    %c0_i32_66 = arith.constant 0 : i32
    %110 = tpu.memref_slice %arg5[%c6_i32_63, %c0_i32_66] : memref<8x128xf32, #tpu.memory_space<vmem>> -> memref<1x128xf32, #tpu.memory_space<vmem>>
    %111 = tpu.memref_squeeze %110 : memref<1x128xf32, #tpu.memory_space<vmem>> -> memref<128xf32, #tpu.memory_space<vmem>>
    %112 = tpu.memref_slice %arg6[%c6_i32_64] : memref<8x!tpu.dma_semaphore, #tpu.memory_space<semaphore_mem>> -> memref<1x!tpu.dma_semaphore, #tpu.memory_space<semaphore_mem>>
    %113 = tpu.memref_squeeze %112 : memref<1x!tpu.dma_semaphore, #tpu.memory_space<semaphore_mem>> -> memref<!tpu.dma_semaphore, #tpu.memory_space<semaphore_mem>>
    tpu.wait_dma2 semaphore(%113 : memref<!tpu.dma_semaphore, #tpu.memory_space<semaphore_mem>>) src(%109 : memref<128xf32, #tpu.memory_space<any>>) dst(%111 : memref<128xf32, #tpu.memory_space<vmem>>)
    %c7_i32_67 = arith.constant 7 : i32
    %c7_i32_68 = arith.constant 7 : i32
    %c0_i32_69 = arith.constant 0 : i32
    %114 = tpu.memref_slice %arg1[%65, %c0_i32_69] : memref<64x128xf32, #tpu.memory_space<any>> -> memref<1x128xf32, #tpu.memory_space<any>>
    %115 = tpu.memref_squeeze %114 : memref<1x128xf32, #tpu.memory_space<any>> -> memref<128xf32, #tpu.memory_space<any>>
    %c0_i32_70 = arith.constant 0 : i32
    %116 = tpu.memref_slice %arg5[%c7_i32_67, %c0_i32_70] : memref<8x128xf32, #tpu.memory_space<vmem>> -> memref<1x128xf32, #tpu.memory_space<vmem>>
    %117 = tpu.memref_squeeze %116 : memref<1x128xf32, #tpu.memory_space<vmem>> -> memref<128xf32, #tpu.memory_space<vmem>>
    %118 = tpu.memref_slice %arg6[%c7_i32_68] : memref<8x!tpu.dma_semaphore, #tpu.memory_space<semaphore_mem>> -> memref<1x!tpu.dma_semaphore, #tpu.memory_space<semaphore_mem>>
    %119 = tpu.memref_squeeze %118 : memref<1x!tpu.dma_semaphore, #tpu.memory_space<semaphore_mem>> -> memref<!tpu.dma_semaphore, #tpu.memory_space<semaphore_mem>>
    tpu.wait_dma2 semaphore(%119 : memref<!tpu.dma_semaphore, #tpu.memory_space<semaphore_mem>>) src(%115 : memref<128xf32, #tpu.memory_space<any>>) dst(%117 : memref<128xf32, #tpu.memory_space<vmem>>)
    %c0_71 = arith.constant 0 : index
    %c0_72 = arith.constant 0 : index
    %120 = vector.load %arg5[%c0_71, %c0_72] : memref<8x128xf32, #tpu.memory_space<vmem>>, vector<8x128xf32>
    %121 = arith.negf %120 : vector<8x128xf32>
    %122 = math.exp %121 : vector<8x128xf32>
    %cst = arith.constant 1.000000e+00 : f32
    %123 = vector.broadcast %cst : f32 to vector<8x128xf32>
    %124 = arith.addf %123, %122 : vector<8x128xf32>
    %125 = arith.divf %123, %124 : vector<8x128xf32>
    %126 = arith.mulf %120, %125 : vector<8x128xf32>
    %c0_73 = arith.constant 0 : index
    %c0_74 = arith.constant 0 : index
    %127 = vector.load %arg2[%c0_73, %c0_74] : memref<128x128xf32, #tpu.memory_space<vmem>>, vector<128x128xf32>
    %cst_75 = arith.constant dense<0.000000e+00> : vector<8x128xf32>
    %128 = tpu.matmul %126, %127, %cst_75 {dimension_numbers = #tpu.dot_dimension_numbers<[1], [0], [0], [1], [0, 0, 1, 1], [], []>} : vector<8x128xf32>, vector<128x128xf32>, vector<8x128xf32> -> vector<8x128xf32>
    %c0_76 = arith.constant 0 : index
    %c0_77 = arith.constant 0 : index
    %129 = vector.load %arg3[%c0_76, %c0_77] : memref<1x128xf32, #tpu.memory_space<vmem>>, vector<1x128xf32>
    %130 = vector.broadcast %129 : vector<1x128xf32> to vector<8x128xf32>
    %131 = arith.addf %128, %130 : vector<8x128xf32>
    %c0_78 = arith.constant 0 : index
    %c0_79 = arith.constant 0 : index
    %132 = vector.load %arg4[%c0_78, %c0_79] : memref<8x128xf32, #tpu.memory_space<vmem>>, vector<8x128xf32>
    tpu.vector_store %arg4[%c0_78, %c0_79], %131 {strides = array<i32>} : memref<8x128xf32, #tpu.memory_space<vmem>>, vector<8x128xf32>,
    return
  }
}

</mosaic_0001>

<bundles_post_ra>
// kernel: timestep_embedder_forward.1
= control target key start
LH: loop header
LB: loop body
LE: loop exit
PB: predicated region body
PF: predicated region fallthrough
CT: control target
= control target key end

     0   :  { %9 = vsyncpa [#allocation6], 0  ;;  %s860_s0 = inlined_call_operand.vmem [shape: s32[8], index: 0, kind: input, shape index: {}]   ;;  %s861_s1 = inlined_call_operand.hbm [shape: f32[64,128], index: 1, kind: input, shape index: {}]   ;;  %s862_s2 = inlined_call_operand.hbm [shape: f32[128,128], index: 2, kind: input, shape index: {}]   ;;  %s863_s3 = inlined_call_operand.vmem [shape: f32[1,128], index: 3, kind: input, shape index: {}]   ;;  %s864_s4 = inlined_call_operand.vmem [shape: f32[8,128], index: 4, kind: output, shape index: {}]  }
   0x1   :  { %s16_s17 = sshll.u32 %s860_s0, 4  ;;  %s17_s17 = int_to_ptr.vmem [resolvable:$true] %s16_s17 }
   0x2   :  { %10 = vsyncpa [#allocation5], 0  ;;  %s24_s20 = sshll.u32 %s862_s2, 4  ;;  %s694_s21 = smov [#allocation4]   ;;  %s25_s20 = int_to_ptr.hbm [resolvable:$true] %s24_s20 }
   0x3   :  { %19 = dma.vmem_to_smem %s17_s17, 16, %s694_s21, [#allocation6]  }
   0x4   :  { %s695_s22 = smov [#allocation7]   ;;  %s696_s24 = smov 128  }
   0x5   :  { %s26_s23 = sshll.u32 %s695_s22, 4  ;;  %s697_s25 = smov 8   ;;  %s27_s23 = int_to_ptr.vmem [resolvable:$true] %s26_s23 }
   0x6   :  { %32 = dma.hbm_to_vmem [thread:$0]  %s25_s20, 2048, %s27_s23, [#allocation5], %s696_s24, %s696_s24, %s697_s25  }
   0x7   :  { %674 = dma.done.wait [#allocation6], 16  }
   0x8   :  { %675 = vsyncadd [#allocation6], 4294967280 }
   0x9   :  { %676 = dma.done.wait [#allocation5], 2048  }
   0xa   :  { %677 = vsyncadd [#allocation5], 4294965248 }
   0xb   :  { %43 = sfence }
   0xc   :  { %s44_s0 = sld [smem:[#allocation4]]  ;;  %s698_s26 = smov [#allocation2]  }
   0xd   :  { %s737_s27 = sshll.u32 %s698_s26, 4  ;;  %s362_s2 = sld [smem:[#allocation4 + $0x1]]  ;;  %s60_s27 = int_to_ptr.vmem [resolvable:$true] %s737_s27 }
   0xe   :  { %s699_s28 = smov [#allocation2 + $0x1]   ;;  %s742_s30 = sld [smem:[#allocation4 + $0x2]] }
   0xf   :  { %s740_s29 = sshll.u32 %s699_s28, 4  ;;  %s700_s5 = smov [#allocation2 + $0x2]   ;;  %s81_s29 = int_to_ptr.vmem [resolvable:$true] %s740_s29 }
  0x10   :  { %s745_s6 = sshll.u32 %s700_s5, 4  ;;  %s747_s7 = sld [smem:[#allocation4 + $0x3]]  ;;  %s102_s6 = int_to_ptr.vmem [resolvable:$true] %s745_s6 }
  0x11   :  { %s759_s20 = scalar_lea.hbm %s861_s1, 64 }
  0x12   :  { %p45_p0 = scmp.gt.s32.totalorder %s44_s0, 0  ;;  %p357_p1 = scmp.lt.s32.totalorder %s44_s0, 63 }
  0x13   :  { %p64_p2 = scmp.gt.s32.totalorder %s362_s2, 0  ;;  %p363_p3 = scmp.lt.s32.totalorder %s362_s2, 63 }
  0x14   :  { %s866_s0 = smov (!%p45_p0, %s44_s0), 0  ;;  %p85_p4 = scmp.gt.s32.totalorder %s742_s30, 0 }
  0x15   :  { %s868_s2 = smov (!%p64_p2, %s362_s2), 0  ;;  %s870_s0 = smov (!%p357_p1, %s866_s0), 63 }
  0x16   :  { %s872_s2 = smov (!%p363_p3, %s868_s2), 63  ;;  %s49_s10 = scalar_lea.hbm %s861_s1, %s870_s0 }
  0x17   :  { %s57_s11 = sshll.u32 %s49_s10, 4  ;;  %s68_s14 = scalar_lea.hbm %s861_s1, %s872_s2  ;;  %s58_s11 = int_to_ptr.hbm [resolvable:$true] %s57_s11 }
  0x18   :  { %s78_s15 = sshll.u32 %s68_s14, 4  ;;  %s482_s16 = sshra.s32 %s58_s11, 4  ;;  %s483_s16 = int_to_ptr.hbm [resolvable:$true] %s482_s16  ;;  %s79_s15 = int_to_ptr.hbm [resolvable:$true] %s78_s15 }
  0x19   :  { %s484_s17 = scalar_lea.hbm %s483_s16, 1  ;;  %p487_p6 = scmp.lt.s32.totalorder %s483_s16, %s861_s1 }
  0x1a   :  { %p485_p5 = scmp.ne.s32.totalorder %s483_s16, %s484_s17  ;;  %p488_p7 = scmp.lt.s32.totalorder %s759_s20, %s484_s17 }
  0x1c   :  { %p489_p8 = por %p488_p7, %p487_p6 }
  0x1e   :  { %p490_p9 = pnand %p489_p8, %p485_p5 }
  0x20   :  { %493 = shalt.err (!%p490_p9)  }
  0x21   :  { %62 = dma.hbm_to_vmem [thread:$0]  %s58_s11, 16, %s60_s27, [#allocation3] }
  0x22   :  { %p369_p10 = scmp.lt.s32.totalorder %s742_s30, 63  ;;  %s506_s23 = sshra.s32 %s79_s15, 4  ;;  %s507_s23 = int_to_ptr.hbm [resolvable:$true] %s506_s23 }
  0x23   :  { %s508_s24 = scalar_lea.hbm %s507_s23, 1  ;;  %p511_p12 = scmp.lt.s32.totalorder %s507_s23, %s861_s1 }
  0x24   :  { %p509_p11 = scmp.ne.s32.totalorder %s507_s23, %s508_s24  ;;  %p512_p13 = scmp.lt.s32.totalorder %s759_s20, %s508_s24 }
  0x26   :  { %p513_p0 = por %p512_p13, %p511_p12 }
  0x28   :  { %p514_p1 = pnand %p513_p0, %p509_p11 }
  0x2a   :  { %517 = shalt.err (!%p514_p1)  }
  0x2b   :  { %83 = dma.hbm_to_vmem [thread:$0]  %s79_s15, 16, %s81_s29, [#allocation3 + $0x1] }
  0x2c   :  { %s86_s26 = scalar_select %p85_p4, %s742_s30, 0 }
  0x2d   :  { %p106_p2 = scmp.gt.s32.totalorder %s747_s7, 0  ;;  %p375_p3 = scmp.lt.s32.totalorder %s747_s7, 63 }
  0x2e   :  { %s874_s26 = smov (!%p369_p10, %s86_s26), 63  ;;  %s701_s9 = smov [#allocation2 + $0x3]  }
  0x2f   :  { %s107_s27 = scalar_select %p106_p2, %s747_s7, 0 }
  0x30   :  { %s89_s5 = scalar_lea.hbm %s861_s1, %s874_s26  ;;  %s786_s10 = sshll.u32 %s701_s9, 4  ;;  %s123_s10 = int_to_ptr.vmem [resolvable:$true] %s786_s10 }
  0x31   :  { %s99_s8 = sshll.u32 %s89_s5, 4  ;;  %s100_s8 = int_to_ptr.hbm [resolvable:$true] %s99_s8 }
  0x32   :  { %s530_s11 = sshra.s32 %s100_s8, 4  ;;  %s531_s11 = int_to_ptr.hbm [resolvable:$true] %s530_s11 }
  0x33   :  { %s532_s29 = scalar_lea.hbm %s531_s11, 1  ;;  %p535_p5 = scmp.lt.s32.totalorder %s531_s11, %s861_s1 }
  0x34   :  { %p533_p4 = scmp.ne.s32.totalorder %s531_s11, %s532_s29  ;;  %p536_p6 = scmp.lt.s32.totalorder %s759_s20, %s532_s29 }
  0x36   :  { %p537_p7 = por %p536_p6, %p535_p5 }
  0x38   :  { %p538_p8 = pnand %p537_p7, %p533_p4 }
  0x3a   :  { %541 = shalt.err (!%p538_p8)  }
  0x3b   :  { %104 = dma.hbm_to_vmem [thread:$0]  %s100_s8, 16, %s102_s6, [#allocation3 + $0x2] }
  0x3c   :  { %s876_s27 = smov (!%p375_p3, %s107_s27), 63  ;;  %s380_s30 = sld [smem:[#allocation4 + $0x4]] }
  0x3d   :  { %s110_s16 = scalar_lea.hbm %s861_s1, %s876_s27  ;;  %s702_s18 = smov [#allocation2 + $0x4]  }
  0x3e   :  { %s120_s17 = sshll.u32 %s110_s16, 4  ;;  %s798_s19 = sshll.u32 %s702_s18, 4  ;;  %s121_s17 = int_to_ptr.hbm [resolvable:$true] %s120_s17  ;;  %s144_s19 = int_to_ptr.vmem [resolvable:$true] %s798_s19 }
  0x3f   :  { %s554_s21 = sshra.s32 %s121_s17, 4  ;;  %s555_s21 = int_to_ptr.hbm [resolvable:$true] %s554_s21 }
  0x40   :  { %s556_s6 = scalar_lea.hbm %s555_s21, 1  ;;  %p559_p10 = scmp.lt.s32.totalorder %s555_s21, %s861_s1 }
  0x41   :  { %p557_p9 = scmp.ne.s32.totalorder %s555_s21, %s556_s6  ;;  %p560_p11 = scmp.lt.s32.totalorder %s759_s20, %s556_s6 }
  0x43   :  { %p561_p12 = por %p560_p11, %p559_p10 }
  0x45   :  { %p562_p13 = pnand %p561_p12, %p557_p9 }
  0x47   :  { %565 = shalt.err (!%p562_p13)  }
  0x48   :  { %125 = dma.hbm_to_vmem [thread:$0]  %s121_s17, 16, %s123_s10, [#allocation3 + $0x3] }
  0x49   :  { %s805_s23 = sld [smem:[#allocation4 + $0x5]]  ;;  %p127_p0 = scmp.gt.s32.totalorder %s380_s30, 0 }
  0x4a   :  { %p381_p1 = scmp.lt.s32.totalorder %s380_s30, 63  ;;  %s703_s24 = smov [#allocation2 + $0x5]  }
  0x4b   :  { %s807_s25 = sshll.u32 %s703_s24, 4  ;;  %s392_s0 = sld [smem:[#allocation4 + $0x6]]  ;;  %s165_s25 = int_to_ptr.vmem [resolvable:$true] %s807_s25 }
  0x4c   :  { %s878_s30 = smov (!%p127_p0, %s380_s30), 0  ;;  %s704_s28 = smov [#allocation2 + $0x6]  }
  0x4d   :  { %s880_s30 = smov (!%p381_p1, %s878_s30), 63  ;;  %s815_s5 = sshll.u32 %s704_s28, 4  ;;  %s186_s5 = int_to_ptr.vmem [resolvable:$true] %s815_s5 }
  0x4e   :  { %s131_s2 = scalar_lea.hbm %s861_s1, %s880_s30 }
  0x4f   :  { %p148_p2 = scmp.gt.s32.totalorder %s805_s23, 0  ;;  %p387_p3 = scmp.lt.s32.totalorder %s805_s23, 63 }
  0x50   :  { %s141_s8 = sshll.u32 %s131_s2, 4  ;;  %s142_s8 = int_to_ptr.hbm [resolvable:$true] %s141_s8 }
  0x51   :  { %p169_p4 = scmp.gt.s32.totalorder %s392_s0, 0  ;;  %p393_p5 = scmp.lt.s32.totalorder %s392_s0, 63 }
  0x52   :  { %s578_s9 = sshra.s32 %s142_s8, 4  ;;  %s579_s9 = int_to_ptr.hbm [resolvable:$true] %s578_s9 }
  0x53   :  { %s580_s10 = scalar_lea.hbm %s579_s9, 1  ;;  %p583_p7 = scmp.lt.s32.totalorder %s579_s9, %s861_s1 }
  0x54   :  { %p581_p6 = scmp.ne.s32.totalorder %s579_s9, %s580_s10  ;;  %p584_p8 = scmp.lt.s32.totalorder %s759_s20, %s580_s10 }
  0x56   :  { %p585_p9 = por %p584_p8, %p583_p7 }
  0x58   :  { %p586_p10 = pnand %p585_p9, %p581_p6 }
  0x5a   :  { %589 = shalt.err (!%p586_p10)  }
  0x5b   :  { %146 = dma.hbm_to_vmem [thread:$0]  %s142_s8, 16, %s144_s19, [#allocation3 + $0x4] }
  0x5c   :  { %s149_s12 = scalar_select %p148_p2, %s805_s23, 0 }
  0x5d   :  { %s170_s13 = scalar_select %p169_p4, %s392_s0, 0 }
  0x5e   :  { %s882_s12 = smov (!%p387_p3, %s149_s12), 63 }
  0x5f   :  { %s884_s13 = smov (!%p393_p5, %s170_s13), 63  ;;  %s152_s15 = scalar_lea.hbm %s861_s1, %s882_s12 }
  0x60   :  { %s162_s16 = sshll.u32 %s152_s15, 4  ;;  %s173_s21 = scalar_lea.hbm %s861_s1, %s884_s13  ;;  %s163_s16 = int_to_ptr.hbm [resolvable:$true] %s162_s16 }
  0x61   :  { %s183_s19 = sshll.u32 %s173_s21, 4  ;;  %s602_s6 = sshra.s32 %s163_s16, 4  ;;  %s603_s6 = int_to_ptr.hbm [resolvable:$true] %s602_s6  ;;  %s184_s19 = int_to_ptr.hbm [resolvable:$true] %s183_s19 }
  0x62   :  { %s604_s7 = scalar_lea.hbm %s603_s6, 1  ;;  %p607_p12 = scmp.lt.s32.totalorder %s603_s6, %s861_s1 }
  0x63   :  { %p605_p11 = scmp.ne.s32.totalorder %s603_s6, %s604_s7  ;;  %p608_p13 = scmp.lt.s32.totalorder %s759_s20, %s604_s7 }
  0x65   :  { %p609_p0 = por %p608_p13, %p607_p12 }
  0x67   :  { %p610_p1 = pnand %p609_p0, %p605_p11 }
  0x69   :  { %613 = shalt.err (!%p610_p1)  }
  0x6a   :  { %167 = dma.hbm_to_vmem [thread:$0]  %s163_s16, 16, %s165_s25, [#allocation3 + $0x5] }
  0x6b   :  { %s398_s24 = sld [smem:[#allocation4 + $0x7]]  ;;  %s626_s0 = sshra.s32 %s184_s19, 4  ;;  %s627_s0 = int_to_ptr.hbm [resolvable:$true] %s626_s0 }
  0x6c   :  { %s628_s26 = scalar_lea.hbm %s627_s0, 1  ;;  %p631_p3 = scmp.lt.s32.totalorder %s627_s0, %s861_s1 }
  0x6d   :  { %p629_p2 = scmp.ne.s32.totalorder %s627_s0, %s628_s26  ;;  %p632_p4 = scmp.lt.s32.totalorder %s759_s20, %s628_s26 }
  0x6f   :  { %p633_p5 = por %p632_p4, %p631_p3 }
  0x71   :  { %p634_p6 = pnand %p633_p5, %p629_p2 }
  0x73   :  { %637 = shalt.err (!%p634_p6)  }
  0x74   :  { %188 = dma.hbm_to_vmem [thread:$0]  %s184_s19, 16, %s186_s5, [#allocation3 + $0x6] }
  0x75   :  { %p190_p7 = scmp.gt.s32.totalorder %s398_s24, 0  ;;  %p399_p8 = scmp.lt.s32.totalorder %s398_s24, 63 }
  0x76   :  { %s705_s25 = smov [#allocation2 + $0x7]  }
  0x77   :  { %s886_s24 = smov (!%p190_p7, %s398_s24), 0  ;;  %s206_s28 = sshll.u32 %s705_s25, 4  ;;  %s207_s28 = int_to_ptr.vmem [resolvable:$true] %s206_s28 }
  0x78   :  { %s888_s24 = smov (!%p399_p8, %s886_s24), 63 }
  0x79   :  { %s194_s10 = scalar_lea.hbm %s861_s1, %s888_s24 }
  0x7a   :  { %s204_s11 = sshll.u32 %s194_s10, 4  ;;  %s205_s11 = int_to_ptr.hbm [resolvable:$true] %s204_s11 }
  0x7b   :  { %s650_s29 = sshra.s32 %s205_s11, 4  ;;  %s651_s29 = int_to_ptr.hbm [resolvable:$true] %s650_s29 }
  0x7c   :  { %s652_s12 = scalar_lea.hbm %s651_s29, 1  ;;  %p655_p10 = scmp.lt.s32.totalorder %s651_s29, %s861_s1 }
  0x7d   :  { %p653_p9 = scmp.ne.s32.totalorder %s651_s29, %s652_s12  ;;  %p656_p11 = scmp.lt.s32.totalorder %s759_s20, %s652_s12 }
  0x7f   :  { %p657_p12 = por %p656_p11, %p655_p10 }
  0x81   :  { %p658_p13 = pnand %p657_p12, %p653_p9 }
  0x83   :  { %661 = shalt.err (!%p658_p13)  }
  0x84   :  { %209 = dma.hbm_to_vmem [thread:$0]  %s205_s11, 16, %s207_s28, [#allocation3 + $0x7] }
  0x85   :  { %678 = dma.done.wait [#allocation3], 16 }
  0x86   :  { %679 = vsyncadd [#allocation3], 4294967280 }
  0x87   :  { %680 = dma.done.wait [#allocation3 + $0x1], 16 }
  0x88   :  { %681 = vsyncadd [#allocation3 + $0x1], 4294967280 }
  0x89   :  { %682 = dma.done.wait [#allocation3 + $0x2], 16 }
  0x8a   :  { %683 = vsyncadd [#allocation3 + $0x2], 4294967280 }
  0x8b   :  { %684 = dma.done.wait [#allocation3 + $0x3], 16 }
  0x8c   :  { %685 = vsyncadd [#allocation3 + $0x3], 4294967280 }
  0x8d   :  { %686 = dma.done.wait [#allocation3 + $0x4], 16 }
  0x8e   :  { %687 = vsyncadd [#allocation3 + $0x4], 4294967280 }
  0x8f   :  { %688 = dma.done.wait [#allocation3 + $0x5], 16 }
  0x90   :  { %689 = vsyncadd [#allocation3 + $0x5], 4294967280 }
  0x91   :  { %690 = dma.done.wait [#allocation3 + $0x6], 16 }
  0x92   :  { %691 = vsyncadd [#allocation3 + $0x6], 4294967280 }
  0x93   :  { %692 = dma.done.wait [#allocation3 + $0x7], 16 }
  0x94   :  { %693 = vsyncadd [#allocation3 + $0x7], 4294967280  ;;  %v262_v0 = vld [vmem:[#allocation7 + $0x78] sm:$0xff]  ;;  %v261_v1 = vld [vmem:[#allocation7 + $0x70] sm:$0xff] }
  0x95   :  { %267 = vmatpush.msra.mxu0 %v262_v0  ;;  %v260_v2 = vld [vmem:[#allocation7 + $0x68] sm:$0xff]  ;;  %v259_v3 = vld [vmem:[#allocation7 + $0x60] sm:$0xff]  ;;  %v226_v4 = vld [vmem:[#allocation2] sm:$0xff] }
  0x96   :  { %v258_v5 = vld [vmem:[#allocation7 + $0x58] sm:$0xff]  ;;  %v404_v6 = vmul.f32 -1.442695, %v226_v4  ;;  %v257_v7 = vld [vmem:[#allocation7 + $0x50] sm:$0xff]  ;;  %v256_v8 = vld [vmem:[#allocation7 + $0x48] sm:$0xff] }
  0x97   :  { %268 = vmatpush.msra.mxu0 %v261_v1  ;;  %v255_v9 = vld [vmem:[#allocation7 + $0x40] sm:$0xff]  ;;  %v254_v11 = vld [vmem:[#allocation7 + $0x38] sm:$0xff]  ;;  %v253_v13 = vld [vmem:[#allocation7 + $0x30] sm:$0xff] }
  0x98   :  { %442 = vpow2.f32 %v404_v6  ;;  %v252_v14 = vld [vmem:[#allocation7 + $0x28] sm:$0xff]  ;;  %v251_v15 = vld [vmem:[#allocation7 + $0x20] sm:$0xff]  ;;  %v250_v16 = vld [vmem:[#allocation7 + $0x18] sm:$0xff] }
  0x99   :  { %269 = vmatpush.msra.mxu0 %v260_v2  ;;  %v249_v18 = vld [vmem:[#allocation7 + $0x10] sm:$0xff]  ;;  %v248_v21 = vld [vmem:[#allocation7 + $0x8] sm:$0xff]  ;;  %v247_v24 = vld [vmem:[#allocation7] sm:$0xff] }
  0x9a   :  { %v441_v31 = vld [vmem:[%s863_s3] ss:$0 sm:$0xff] }
  0x9b   :  { %270 = vmatpush.msra.mxu0 %v259_v3 }
  0x9d   :  { %271 = vmatpush.msra.mxu0 %v258_v5 }
  0x9e   :  { %v443_v10 = vpop.eup %442 }
  0x9f   :  { %272 = vmatpush.msra.mxu0 %v257_v7  ;;  %v230_v12 = vadd.f32 1.0, %v443_v10 }
  0xa1   :  { %273 = vmatpush.msra.mxu0 %v256_v8  ;;  %444 = vrcp.f32 %v230_v12  ;;  %v242_v20 = vand.u32 2147483648, %v230_v12  ;;  %vm236_vm0 = vweird.f32 %v230_v12  ;;  %v240_v23 = vand.u32 2147483647, %v230_v12 }
  0xa3   :  { %274 = vmatpush.msra.mxu0 %v255_v9  ;;  %v243_v26 = vor.u32 1.1754944e-38, %v242_v20  ;;  %vm241_vm3 = vcmp.eq.f32.partialorder %v240_v23, 8.507059e+37 }
  0xa5   :  { %275 = vmatpush.msra.mxu0 %v254_v11 }
  0xa7   :  { %276 = vmatpush.msra.mxu0 %v253_v13  ;;  %v445_v17 = vpop.eup %444 }
  0xa8   :  { %v232_v19 = vmul.f32 %v445_v17, %v230_v12  ;;  %vm237_vm1 = vweird.f32 %v445_v17 }
  0xa9   :  { %277 = vmatpush.msra.mxu0 %v252_v14  ;;  %vm238_vm2 = vmor %vm236_vm0, %vm237_vm1 }
  0xaa   :  { %v233_v22 = vsub.f32 1.0, %v232_v19 }
  0xab   :  { %278 = vmatpush.msra.mxu0 %v251_v15 }
  0xac   :  { %v234_v25 = vmul.f32 %v445_v17, %v233_v22 }
  0xad   :  { %279 = vmatpush.msra.mxu0 %v250_v16 }
  0xae   :  { %v235_v27 = vadd.f32 %v445_v17, %v234_v25 }
  0xaf   :  { %280 = vmatpush.msra.mxu0 %v249_v18 }
  0xb0   :  { %v239_v28 = vsel %vm238_vm2, %v445_v17, %v235_v27 }
  0xb1   :  { %281 = vmatpush.msra.mxu0 %v248_v21  ;;  %v244_v29 = vsel %vm241_vm3, %v243_v26, %v239_v28 }
  0xb2   :  { %v246_v30 = vmul.f32 %v244_v29, %v226_v4 }
  0xb3   :  { %282 = vmatpush.msra.mxu0 %v247_v24 }
  0xb4   :  { %283 = vmatmul.f32.vlgmr.msra.gmra.mxu0 %v246_v30 }
 0x131   :  { %v284_v32 = vpop.f32.mrf.mxu0 }
 0x132   :  { %v285_v33 = vadd.f32 %v441_v31, %v284_v32 }
 0x134   :  { %287 = vst [vmem:[%s864_s4] sm:$0xff] %v285_v33 }
 0x135   :  { %292 = vsyncpa [#allocation5], 1 }
 0x136   :  { %293 = vsyncpa [#allocation6], 1 }
 0x137   :  { %294 = vsyncmov [#allocation3] }
 0x13a   :  { %s295_s15 = vpop.sfrf %294 }
 0x13b   :  { %p405_p0 = scmp.ne.s32.totalorder %s295_s15, 0 }
 0x13d   :  { %299 = shalt.err (%p405_p0)  }
 0x13e   :  { %301 = vsyncmov [#allocation3 + $0x1] }
 0x141   :  { %s302_s16 = vpop.sfrf %301 }
 0x142   :  { %p406_p1 = scmp.ne.s32.totalorder %s302_s16, 0 }
 0x144   :  { %306 = shalt.err (%p406_p1)  }
 0x145   :  { %308 = vsyncmov [#allocation3 + $0x2] }
 0x148   :  { %s309_s17 = vpop.sfrf %308 }
 0x149   :  { %p407_p2 = scmp.ne.s32.totalorder %s309_s17, 0 }
 0x14b   :  { %313 = shalt.err (%p407_p2)  }
 0x14c   :  { %315 = vsyncmov [#allocation3 + $0x3] }
 0x14f   :  { %s316_s3 = vpop.sfrf %315 }
 0x150   :  { %p408_p3 = scmp.ne.s32.totalorder %s316_s3, 0 }
 0x152   :  { %320 = shalt.err (%p408_p3)  }
 0x153   :  { %322 = vsyncmov [#allocation3 + $0x4] }
 0x156   :  { %s323_s4 = vpop.sfrf %322 }
 0x157   :  { %p409_p4 = scmp.ne.s32.totalorder %s323_s4, 0 }
 0x159   :  { %327 = shalt.err (%p409_p4)  }
 0x15a   :  { %329 = vsyncmov [#allocation3 + $0x5] }
 0x15d   :  { %s330_s18 = vpop.sfrf %329 }
 0x15e   :  { %p410_p5 = scmp.ne.s32.totalorder %s330_s18, 0 }
 0x160   :  { %334 = shalt.err (%p410_p5)  }
 0x161   :  { %336 = vsyncmov [#allocation3 + $0x6] }
 0x164   :  { %s337_s21 = vpop.sfrf %336 }
 0x165   :  { %p411_p6 = scmp.ne.s32.totalorder %s337_s21, 0 }
 0x167   :  { %341 = shalt.err (%p411_p6)  }
 0x168   :  { %343 = vsyncmov [#allocation3 + $0x7] }
 0x16b   :  { %s344_s19 = vpop.sfrf %343 }
 0x16c   :  { %p412_p7 = scmp.ne.s32.totalorder %s344_s19, 0 }
 0x16e   :  { %348 = shalt.err (%p412_p7)  }

</bundles_post_ra>
